<compile_context>
chip_gen: v7x
topology: tpu7x:2x2x1
jax: 0.10.0
libtpu: 0.0.40
codegen_flags: <defaults>
</compile_context>

<pallas_src>
import functools

import jax
import jax.numpy as jnp
from jax.experimental import pallas as pl
from jax.experimental.pallas import tpu as pltpu


def _sdpa_kernel(q_ref, k_ref, v_ref, b_ref, out_ref, attn_ref, *,
                 inv_temperature, compute_dtype, exact_softmax):
    f32 = jnp.float32
    qc = q_ref[...].astype(compute_dtype)        # (G, TQ, D)
    kc = k_ref[...].astype(compute_dtype)        # (G, L,  D)

    # scores = q @ k^T per head; contract D directly on the MXU (no k transpose).
    scores = jax.lax.dot_general(
        qc, kc,
        dimension_numbers=(((2,), (2,)), ((0,), (0,))),
        preferred_element_type=f32)              # (G, TQ, L) f32

    # score_util='np' + mask folded into the bias, then /temperature:
    #   (q k^T + bias) * (1/T); bias is -inf where masked.
    scores = (scores + b_ref[...].astype(f32)) * inv_temperature

    # Numerically stable softmax over the key axis (dim=2).  Fully-masked rows
    # produce NaN, matching the PyTorch module.
    row_max = jnp.max(scores, axis=-1, keepdims=True)
    shifted = scores - row_max
    if exact_softmax:
        e = jnp.exp(shifted)
        p = e / jnp.sum(e, axis=-1, keepdims=True)
    else:
        # bf16 exp -> bf16 EUP path on v6e/v7x (v5e simply upcasts); the row-sum
        # and normalizer stay in f32 for accuracy; approx reciprocal is a free
        # EUP slot.
        e32 = jnp.exp(shifted.astype(compute_dtype)).astype(f32)
        denom = jnp.sum(e32, axis=-1, keepdims=True)
        p = e32 * pl.reciprocal(denom, approx=True)

    attn_ref[...] = p.astype(attn_ref.dtype)

    # output = attn @ v per head (dropout is identity in eval mode).
    out = jax.lax.dot_general(
        p.astype(compute_dtype), v_ref[...].astype(compute_dtype),
        dimension_numbers=(((2,), (1,)), ((0,), (0,))),
        preferred_element_type=f32)              # (G, TQ, D)
    out_ref[...] = out.astype(out_ref.dtype)


def _vmem_capacity_bytes():
    try:
        return int(pltpu.get_tpu_info().vmem_capacity_bytes)
    except Exception:
        return 64 * 1024 * 1024   # conservative: v7x per-TensorCore VMEM


def _estimate_step_bytes(g, tq, l, d, *, bias_bytes, attn_bytes, compute_bytes):
    """Per-grid-step VMEM estimate: double-buffered streams + in-kernel temporaries."""
    dbl = 2  # BlockSpec double buffering (K/V buffers included even though resident)
    streams = dbl * (
        g * tq * d * 4                 # q tile (f32 in HBM)
        + 2 * g * l * d * 4            # full-length K and V blocks
        + g * tq * l * bias_bytes      # folded attn_w/mask bias
        + g * tq * l * attn_bytes      # attention-probability output
        + g * tq * d * 4)              # attention output tile
    temps = (
        g * (tq + 2 * l) * d * compute_bytes     # compute-dtype copies of q/k/v
        + g * tq * l * (4 + 2 * compute_bytes)   # f32 scores + exp/prob temporaries
        + g * tq * d * 4)                        # f32 PV accumulator
    return streams + temps


def _choose_tiling(bnh, l, d, budget_bytes, *, bias_bytes, attn_bytes, compute_bytes):
    est = functools.partial(_estimate_step_bytes, l=l, d=d, bias_bytes=bias_bytes,
                            attn_bytes=attn_bytes, compute_bytes=compute_bytes)
    # TQ is the MXU M dimension per (batched) matmul: target 256 (v6e/v7x MXU
    # width; >=128 also saturates v5e's 128-wide MXU) and shrink only if a
    # single-head tile would exceed the VMEM budget.
    tq_cands = [t for t in (256, 128, 64, 32, 16, 8) if l % t == 0] or [l]
    tq = tq_cands[-1]
    for t in tq_cands:
        if est(1, t) <= budget_bytes:
            tq = t
            break
    # Heads per step only amortize per-grid-step overhead (~0.35us); the G batch
    # dim does NOT fuse into the MXU M dim.  Cap at bnh//2 so the head grid axis
    # stays shardable across the two TensorCores of a v7x megacore.
    g = 1
    g_max = max(1, bnh // 2)
    for cand in range(2, g_max + 1):
        if bnh % cand:
            continue
        if est(cand, tq) > budget_bytes:
            break
        g = cand
    return g, tq


def scaled_dot_product_attention(q, k, v, attn_w=None, mask=None, temperature=1.0,
                                 compute_dtype=jnp.bfloat16, attn_dtype=None):
    """q/k/v: (BNH, L, D); attn_w: (BNH, L, L) or None; mask: (BNH, L, L) bool/int
    (nonzero => masked) or None.  Returns (output, attn) like the PyTorch module."""
    bnh, l, d = q.shape
    assert k.shape == (bnh, l, d) and v.shape == (bnh, l, d)
    if attn_w is not None:
        assert attn_w.shape == (bnh, l, l)
    if mask is not None:
        assert mask.shape == (bnh, l, l)

    is_bf16 = jnp.dtype(compute_dtype) == jnp.dtype(jnp.bfloat16)
    if attn_dtype is None:
        # Returned attention matrix: bf16 by default (it is the largest HBM write),
        # f32 only on the bit-parity path.
        attn_dtype = jnp.bfloat16 if is_bf16 else jnp.float32
    bias_dtype = jnp.bfloat16 if is_bf16 else jnp.float32

    # Fold score_util='np' attn_w and the boolean mask into a single additive bias
    # stream (-inf where masked).  Cast the mask via bool so arbitrary nonzero
    # integers are never truncated.  In production, fuse this into the attn_w
    # producer so it adds no extra HBM pass.
    if attn_w is None:
        bias = jnp.zeros((bnh, l, l), dtype=bias_dtype)
    else:
        bias = attn_w
    if mask is not None:
        bias = jnp.where(mask.astype(bool), -jnp.inf, bias)
    bias = bias.astype(bias_dtype)

    bias_bytes = jnp.dtype(bias_dtype).itemsize
    attn_bytes = jnp.dtype(attn_dtype).itemsize
    compute_bytes = jnp.dtype(compute_dtype).itemsize

    vmem_cap = _vmem_capacity_bytes()
    budget = int(0.45 * vmem_cap)                       # tiling budget
    vmem_limit = min(int(0.80 * vmem_cap), vmem_cap - (16 << 20))  # consistent limit

    g, tq = _choose_tiling(bnh, l, d, budget, bias_bytes=bias_bytes,
                           attn_bytes=attn_bytes, compute_bytes=compute_bytes)
    grid = (bnh // g, l // tq)

    kernel = functools.partial(
        _sdpa_kernel,
        inv_temperature=float(1.0 / float(temperature)),
        compute_dtype=compute_dtype,
        exact_softmax=not is_bf16,
    )

    q_spec = pl.BlockSpec((g, tq, d), lambda h, i: (h, i, 0))
    # K/V block index depends only on h: the pipeline re-DMAs them only at head
    # transitions, so they stay resident across all query tiles of a head group.
    kv_spec = pl.BlockSpec((g, l, d), lambda h, i: (h, 0, 0))
    ll_spec = pl.BlockSpec((g, tq, l), lambda h, i: (h, i, 0))

    out, attn = pl.pallas_call(
        kernel,
        out_shape=(
            jax.ShapeDtypeStruct((bnh, l, d), q.dtype),
            jax.ShapeDtypeStruct((bnh, l, l), attn_dtype),
        ),
        grid_spec=pltpu.PrefetchScalarGridSpec(
            num_scalar_prefetch=0,
            grid=grid,
            in_specs=[q_spec, kv_spec, kv_spec, ll_spec],
            out_specs=(q_spec, ll_spec),
        ),
        compiler_params=pltpu.CompilerParams(
            dimension_semantics=("parallel", "parallel"),
            vmem_limit_bytes=vmem_limit,
        ),
    )(q, k, v, bias)
    return out, attn


def _reference(q, k, v, attn_w, mask, temperature):
    scores = jnp.einsum("bld,bmd->blm", q, k)
    scores = scores + attn_w
    scores = scores / temperature
    scores = jnp.where(mask, -jnp.inf, scores)
    p = jax.nn.softmax(scores, axis=-1)
    out = jnp.einsum("blm,bmd->bld", p, v)
    return out, p


if __name__ == "__main__":
    key = jax.random.PRNGKey(0)
    b, nh, L, D = 2, 4, 8, 32
    BNH = b * nh
    temperature = float(D) ** 0.5

    k0, k1, k2, k3 = jax.random.split(key, 4)
    q = jax.random.normal(k0, (BNH, L, D), dtype=jnp.float32)
    kk = jax.random.normal(k1, (BNH, L, D), dtype=jnp.float32)
    v = jax.random.normal(k2, (BNH, L, D), dtype=jnp.float32)
    attn_w = 0.1 * jax.random.normal(k3, (BNH, L, L), dtype=jnp.float32)

    # Causal-style boolean mask (True => masked out).
    row = jnp.arange(L)[:, None]
    col = jnp.arange(L)[None, :]
    mask = jnp.broadcast_to(col > row, (BNH, L, L))

    ref_out, ref_attn = _reference(q, kk, v, attn_w, mask, temperature)

    # Fast path: bf16 MXU operands, bf16 L^2 streams, f32 accumulation.
    out, attn = scaled_dot_product_attention(q, kk, v, attn_w, mask, temperature)
    out = jax.block_until_ready(out)
    attn = jax.block_until_ready(attn)
    assert out.dtype == q.dtype and attn.dtype == jnp.bfloat16
    assert jnp.allclose(out, ref_out, atol=4e-2, rtol=4e-2), "output mismatch (bf16 path)"
    assert jnp.allclose(attn.astype(jnp.float32), ref_attn, atol=4e-2, rtol=4e-2), \
        "attn mismatch (bf16 path)"

    # Bit-parity path: f32 operands, f32 attn output, exact-divide softmax.
    out32, attn32 = scaled_dot_product_attention(
        q, kk, v, attn_w, mask, temperature,
        compute_dtype=jnp.float32, attn_dtype=jnp.float32)
    out32 = jax.block_until_ready(out32)
    attn32 = jax.block_until_ready(attn32)
    assert jnp.allclose(out32, ref_out, atol=1e-5, rtol=1e-5), "output mismatch (f32 path)"
    assert jnp.allclose(attn32, ref_attn, atol=1e-5, rtol=1e-5), "attn mismatch (f32 path)"

    print("KERNEL_OK")
</pallas_src>

<mosaic_0001>
module attributes {stable_mosaic.version = 11 : i64} {
  func.func @_sdpa_kernel(%arg0: i32, %arg1: i32, %arg2: memref<4x8x32xf32, #tpu.memory_space<vmem>>, %arg3: memref<4x8x32xf32, #tpu.memory_space<vmem>>, %arg4: memref<4x8x32xf32, #tpu.memory_space<vmem>>, %arg5: memref<4x8x8xbf16, #tpu.memory_space<vmem>>, %arg6: memref<4x8x32xf32, #tpu.memory_space<vmem>>, %arg7: memref<4x8x8xbf16, #tpu.memory_space<vmem>>) attributes {dimension_semantics = [#tpu.dimension_semantics<parallel>, #tpu.dimension_semantics<parallel>], iteration_bounds = array<i64: 2, 1>, scalar_prefetch = 0 : i64, scratch_operands = 0 : i64, tpu.core_type = #tpu.core_type<tc>, window_params = [{transform_indices = @transform_0, window_bounds = array<i64: 4, 8, 32>}, {transform_indices = @transform_1, window_bounds = array<i64: 4, 8, 32>}, {transform_indices = @transform_2, window_bounds = array<i64: 4, 8, 32>}, {transform_indices = @transform_3, window_bounds = array<i64: 4, 8, 8>}, {transform_indices = @transform_4, window_bounds = array<i64: 4, 8, 32>}, {transform_indices = @transform_5, window_bounds = array<i64: 4, 8, 8>}]} {
    %c0 = arith.constant 0 : index
    %c0_0 = arith.constant 0 : index
    %c0_1 = arith.constant 0 : index
    %0 = vector.load %arg2[%c0, %c0_0, %c0_1] : memref<4x8x32xf32, #tpu.memory_space<vmem>>, vector<4x8x32xf32>
    %1 = arith.truncf %0 : vector<4x8x32xf32> to vector<4x8x32xbf16>
    %c0_2 = arith.constant 0 : index
    %c0_3 = arith.constant 0 : index
    %c0_4 = arith.constant 0 : index
    %2 = vector.load %arg3[%c0_2, %c0_3, %c0_4] : memref<4x8x32xf32, #tpu.memory_space<vmem>>, vector<4x8x32xf32>
    %3 = arith.truncf %2 : vector<4x8x32xf32> to vector<4x8x32xbf16>
    %cst = arith.constant dense<0.000000e+00> : vector<4x8x8xf32>
    %4 = tpu.matmul %1, %3, %cst {dimension_numbers = #tpu.dot_dimension_numbers<[2], [2], [1], [1], [0, 0, 0, 1, 1, 1], [0], [0]>} : vector<4x8x32xbf16>, vector<4x8x32xbf16>, vector<4x8x8xf32> -> vector<4x8x8xf32>
    %c0_5 = arith.constant 0 : index
    %c0_6 = arith.constant 0 : index
    %c0_7 = arith.constant 0 : index
    %5 = vector.load %arg5[%c0_5, %c0_6, %c0_7] : memref<4x8x8xbf16, #tpu.memory_space<vmem>>, vector<4x8x8xbf16>
    %6 = arith.extf %5 : vector<4x8x8xbf16> to vector<4x8x8xf32>
    %7 = arith.addf %4, %6 : vector<4x8x8xf32>
    %cst_8 = arith.constant 0.176776692 : f32
    %8 = vector.broadcast %cst_8 : f32 to vector<4x8x8xf32>
    %9 = arith.mulf %7, %8 : vector<4x8x8xf32>
    %cst_9 = arith.constant dense<0xFF800000> : vector<4x8xf32>
    %10 = vector.multi_reduction <maximumf>, %9, %cst_9 [2] : vector<4x8x8xf32> to vector<4x8xf32>
    %11 = vector.shape_cast %10 : vector<4x8xf32> to vector<4x8x1xf32>
    %12 = vector.broadcast %11 : vector<4x8x1xf32> to vector<4x8x8xf32>
    %13 = arith.subf %9, %12 : vector<4x8x8xf32>
    %14 = arith.truncf %13 : vector<4x8x8xf32> to vector<4x8x8xbf16>
    %15 = math.exp %14 : vector<4x8x8xbf16>
    %16 = arith.extf %15 : vector<4x8x8xbf16> to vector<4x8x8xf32>
    %cst_10 = arith.constant dense<0.000000e+00> : vector<4x8xf32>
    %17 = vector.multi_reduction <add>, %16, %cst_10 [2] : vector<4x8x8xf32> to vector<4x8xf32>
    %18 = vector.shape_cast %17 : vector<4x8xf32> to vector<4x8x1xf32>
    %19 = tpu.reciprocal %18 {approx = true} : vector<4x8x1xf32> -> vector<4x8x1xf32>
    %20 = vector.broadcast %19 : vector<4x8x1xf32> to vector<4x8x8xf32>
    %21 = arith.mulf %16, %20 : vector<4x8x8xf32>
    %22 = arith.truncf %21 : vector<4x8x8xf32> to vector<4x8x8xbf16>
    %c0_11 = arith.constant 0 : index
    %c0_12 = arith.constant 0 : index
    %c0_13 = arith.constant 0 : index
    %23 = vector.load %arg7[%c0_11, %c0_12, %c0_13] : memref<4x8x8xbf16, #tpu.memory_space<vmem>>, vector<4x8x8xbf16>
    tpu.vector_store %arg7[%c0_11, %c0_12, %c0_13], %22 {strides = array<i32>} : memref<4x8x8xbf16, #tpu.memory_space<vmem>>, vector<4x8x8xbf16>,
    %24 = arith.truncf %21 : vector<4x8x8xf32> to vector<4x8x8xbf16>
    %c0_14 = arith.constant 0 : index
    %c0_15 = arith.constant 0 : index
    %c0_16 = arith.constant 0 : index
    %25 = vector.load %arg4[%c0_14, %c0_15, %c0_16] : memref<4x8x32xf32, #tpu.memory_space<vmem>>, vector<4x8x32xf32>
    %26 = arith.truncf %25 : vector<4x8x32xf32> to vector<4x8x32xbf16>
    %cst_17 = arith.constant dense<0.000000e+00> : vector<4x8x32xf32>
    %27 = tpu.matmul %24, %26, %cst_17 {dimension_numbers = #tpu.dot_dimension_numbers<[2], [1], [1], [2], [0, 0, 0, 1, 1, 2], [0], [0]>} : vector<4x8x8xbf16>, vector<4x8x32xbf16>, vector<4x8x32xf32> -> vector<4x8x32xf32>
    %c0_18 = arith.constant 0 : index
    %c0_19 = arith.constant 0 : index
    %c0_20 = arith.constant 0 : index
    %28 = vector.load %arg6[%c0_18, %c0_19, %c0_20] : memref<4x8x32xf32, #tpu.memory_space<vmem>>, vector<4x8x32xf32>
    tpu.vector_store %arg6[%c0_18, %c0_19, %c0_20], %27 {strides = array<i32>} : memref<4x8x32xf32, #tpu.memory_space<vmem>>, vector<4x8x32xf32>,
    return
  }
  func.func @transform_0(%arg0: i32, %arg1: i32) -> (i32, i32, i32) {
    %c0_i32 = arith.constant 0 : i32
    %c0_i32_0 = arith.constant 0 : i32
    return %arg0, %arg1, %c0_i32 : i32, i32, i32
  }
  func.func @transform_1(%arg0: i32, %arg1: i32) -> (i32, i32, i32) {
    %c0_i32 = arith.constant 0 : i32
    %c0_i32_0 = arith.constant 0 : i32
    %c0_i32_1 = arith.constant 0 : i32
    return %arg0, %c0_i32, %c0_i32_0 : i32, i32, i32
  }
  func.func @transform_2(%arg0: i32, %arg1: i32) -> (i32, i32, i32) {
    %c0_i32 = arith.constant 0 : i32
    %c0_i32_0 = arith.constant 0 : i32
    %c0_i32_1 = arith.constant 0 : i32
    return %arg0, %c0_i32, %c0_i32_0 : i32, i32, i32
  }
  func.func @transform_3(%arg0: i32, %arg1: i32) -> (i32, i32, i32) {
    %c0_i32 = arith.constant 0 : i32
    %c0_i32_0 = arith.constant 0 : i32
    return %arg0, %arg1, %c0_i32 : i32, i32, i32
  }
  func.func @transform_4(%arg0: i32, %arg1: i32) -> (i32, i32, i32) {
    %c0_i32 = arith.constant 0 : i32
    %c0_i32_0 = arith.constant 0 : i32
    return %arg0, %arg1, %c0_i32 : i32, i32, i32
  }
  func.func @transform_5(%arg0: i32, %arg1: i32) -> (i32, i32, i32) {
    %c0_i32 = arith.constant 0 : i32
    %c0_i32_0 = arith.constant 0 : i32
    return %arg0, %arg1, %c0_i32 : i32, i32, i32
  }
}

</mosaic_0001>

<bundles_post_ra>
// kernel: tpu_custom_call.1
= control target key start
LH: loop header
LB: loop body
LE: loop exit
PB: predicated region body
PF: predicated region fallthrough
CT: control target
= control target key end

     0   :  { %s2048_s0 = inlined_call_operand.hbm [shape: f32[8,8,32], index: 0, kind: input, shape index: {}]   ;;  %s2049_s1 = inlined_call_operand.hbm [shape: f32[8,8,32], index: 1, kind: input, shape index: {}]   ;;  %s2050_s2 = inlined_call_operand.hbm [shape: f32[8,8,32], index: 2, kind: input, shape index: {}]   ;;  %s2051_s3 = inlined_call_operand.hbm [shape: bf16[8,8,8], index: 3, kind: input, shape index: {}]   ;;  %s2052_s4 = inlined_call_operand.hbm [shape: f32[8,8,32], index: 4, kind: output, shape index: {0}]   ;;  %s2053_s5 = inlined_call_operand.hbm [shape: bf16[8,8,8], index: 5, kind: output, shape index: {1}]  }
   0x1   :  { %2066 = sst [smem:[#allocation24_spill]] %s2048_s0 }
   0x2   :  { %2067 = sst [smem:[#allocation25_spill]] %s2049_s1 }
   0x3   :  { %11 = vsyncpa [#allocation3], 0 }
   0x4   :  { %13 = vsyncpa [#allocation3 + $0x1], 0 }
   0x5   :  { %14 = vsyncpa [#allocation6], 0 }
   0x6   :  { %16 = vsyncpa [#allocation6 + $0x1], 0 }
   0x7   :  { %17 = vsyncpa [#allocation9], 0 }
   0x8   :  { %19 = vsyncpa [#allocation9 + $0x1], 0 }
   0x9   :  { %20 = vsyncpa [#allocation4], 0 }
   0xa   :  { %22 = vsyncpa [#allocation4 + $0x1], 0 }
   0xb   :  { %23 = vsyncpa [#allocation12], 0 }
   0xc   :  { %25 = vsyncpa [#allocation12 + $0x1], 0  ;;  %s1616_s18 = smov 0   ;;  %s1618_s19 = smov 0  }
   0xd   :  { %s1620_s20 = smov 0   ;;  %s1622_s21 = smov 0  }
   0xe   :  { %s1624_s22 = smov 0   ;;  %s1626_s23 = smov 0  }
   0xf LB: > { %2068 = sst [smem:[#allocation18_spill]] %s1548_s18  ;;  %s1647_s24 = sadd.s32 4294967295, %s1568_s23   ;;  %s1568_s23 = sphi %s1626_s23, %s31_s23   ;;  %s1564_s22 = sphi %s1624_s22, %s2101_s22   ;;  %s1560_s21 = sphi %s1622_s21, %s2100_s21   ;;  %s1556_s20 = sphi %s1620_s20, %s2096_s20   ;;  %s1552_s19 = sphi %s1618_s19, %s2099_s19   ;;  %s1548_s18 = sphi %s1616_s18, %s2098_s18  }
  0x10   : > { %2069 = sst [smem:[#allocation19_spill]] %s1556_s20  ;;  %s1101_s25 = sadd.s32 4294967294, %s1568_s23  }
  0x11   : > { %2070 = sst [smem:[#allocation20_spill]] %s1568_s23  ;;  %s43_s26 = sadd.s32 1, %s1564_s22 }
  0x12   : > { %s52_s27 = sadd.s32 1, %s1556_s20  ;;  %p45_p0 = scmp.ge.s32.totalorder %s43_s26, 2 }
  0x13   : > { %p59_p1 = scmp.ne.s32.totalorder %s1556_s20, %s1552_s19  ;;  %p60_p2 = scmp.eq.s32.totalorder %s1568_s23, 0 }
  0x14   : > { %p65_p3 = scmp.ne.s32.totalorder %s1552_s19, %s1548_s18  ;;  %s2103_s26 = smov (%p45_p0, %s43_s26), 0 }
  0x15   : > { %2071 = sst [smem:[#allocation21_spill]] %s2103_s26  ;;  %p1659_p4 = por %p60_p2, %p59_p1 }
  0x16   : > { %p66_p5 = scmp.eq.s32.totalorder %s1647_s24, 0  ;;  %s47_s29 = ssub.s32 %s1564_s22, %s2103_s26 }
  0x17   : > { %p171_p6 = scmp.eq.s32.totalorder %s1647_s24, 1  ;;  %p50_p7 = scmp.eq.s32.totalorder %s47_s29, 0 }
  0x18   : > { %p1667_p8 = por %p66_p5, %p65_p3  ;;  %p177_p10 = scmp.eq.s32.totalorder %s1101_s25, 1 }
  0x19   : > { %p1671_p9 = por %p171_p6, %p59_p1  ;;  %p1250_p13 = scmp.lt.s32.totalorder %s1568_s23, 2 }
  0x1a   : > { %s2073_s30 = scalar_select %p1667_p8, 1, 0 }
  0x1b   : > { %s2074_s6 = scalar_select %p1671_p9, 1, 0 }
  0x1c   : > { %s1676_s7 = scalar_select %p50_p7, %s1556_s20, %s52_s27  }
  0x1d   : > { %p1678_p11 = por %p177_p10, %p65_p3  ;;  %s1685_s9 = sand.u32 1, %s1556_s20  }
  0x1e   : > { %2075 = sst [smem:[#allocation22_spill]] %s1676_s7  ;;  %s1688_s10 = sshll.u32 %s1685_s9, 5 }
  0x1f   : > { %s2076_s8 = scalar_select %p1678_p11, 1, 0 }
  0x20   : > { %s1691_s11 = sshll.u32 %s1564_s22, 9  ;;  %p1695_p0 = pnand %p1250_p13, %p1659_p4 }
  0x21   : > { %2077 = sst [smem:[#allocation23_spill]] %s2076_s8  ;;  %s247_s13 = sand.u32 1, %s1568_s23  }
  0x22   : > { %s2079_s1 = sld [smem:[#allocation25_spill]]  ;;  %s251_s17 = scalar_lea.vmem [#allocation5], %s1688_s10 }
  0x23   : > { %s258_s25 = sshll.u32 %s251_s17, 4  ;;  %s1711_s27 = scalar_lea.sflag [#allocation6], %s247_s13  ;;  %s1708_s25 = int_to_ptr.vmem [resolvable:$true] %s258_s25 }
  0x24   : > { %p1717_p4 = pneg %p1695_p0 }
  0x28   : > { %s1704_s16 = scalar_lea.hbm %s2079_s1, %s1691_s11  ;;  %s1331_s17 = scalar_lea.hbm %s2079_s1, 1024 }
  0x29   : > { %s1326_s28 = scalar_lea.hbm %s1704_s16, 512  ;;  %p1332_p7 = scmp.lt.u32.totalorder %s1704_s16, %s2079_s1 }
  0x2a   : > { %p1327_p3 = scmp.ne.s32.totalorder %s1704_s16, %s1326_s28  ;;  %p1333_p10 = scmp.lt.u32.totalorder %s1331_s17, %s1326_s28 }
  0x2b   : > { %p1335_p12 = scmp.lt.u32.totalorder %s1326_s28, %s1704_s16 }
  0x2c   : > { %p1329_p5 = pnand %p1717_p4, %p1327_p3  ;;  %p1334_p13 = por %p1333_p10, %p1332_p7 }
  0x2e   : > { %p1330_p6 = pneg %p1329_p5  ;;  %p1336_p1 = por %p1335_p12, %p1334_p13 }
  0x30   : > { %p1337_p2 = pnand %p1336_p1, %p1330_p6 }
  0x32   : > { %1340 = shalt.err (!%p1337_p2)
}
  0x33   : > { %s1341_s13 = scalar_lea.vmem %s1708_s25, 512  ;;  %s1570_s14 = smov [#allocation5]  }
  0x34   : > { %p1342_p3 = scmp.ne.s32.totalorder %s1708_s25, %s1341_s13  ;;  %s1346_s15 = sshll.u32 %s1570_s14, 4  ;;  %s1347_s15 = int_to_ptr.vmem [resolvable:$false] %s1346_s15 }
  0x35   : > { %s1348_s26 = scalar_lea.vmem %s1347_s15, 1024  ;;  %p1349_p9 = scmp.lt.s32.totalorder %s1708_s25, %s1347_s15 }
  0x36   : > { %p1344_p5 = pnand %p1342_p3, %p1717_p4  ;;  %p1350_p8 = scmp.lt.s32.totalorder %s1348_s26, %s1341_s13 }
  0x38   : > { %p1345_p11 = pneg %p1344_p5  ;;  %p1351_p7 = por %p1350_p8, %p1349_p9 }
  0x3a   : > { %p1352_p10 = pnand %p1351_p7, %p1345_p11 }
  0x3c   : > { %1355 = shalt.err (!%p1352_p10)
}
  0x3d   : > { %s2057_s7 = smov 128   ;;  %s2059_s28 = smov 8  }
  0x3e   : > { %1236 = dma.hbm_to_vmem [thread:$0]  (!%p1695_p0), %s1704_s16, 512, %s1708_s25, %s1711_s27, %s2057_s7, %s2057_s7, %s2059_s28  }
  0x3f   : > { %p2081_p8 = scmp.lt.s32.totalorder %s1568_s23, 3  ;;  %p2082_p9 = scmp.ge.s32.totalorder %s1568_s23, 1 }
  0x40   : > { %s2084_s0 = sld [smem:[#allocation24_spill]]  ;;  %s229_s26 = scalar_lea.vmem [#allocation2], %s1688_s10 }
  0x41   : > { %p1748_p11 = pnand %p2082_p9, %p2081_p8  ;;  %s237_s1 = sshll.u32 %s229_s26, 4  ;;  %s1759_s1 = int_to_ptr.vmem [resolvable:$true] %s237_s1 }
  0x42   : > { %s1765_s7 = scalar_lea.hbm %s2050_s2, %s1691_s11  ;;  %s226_s28 = scalar_lea.sflag [#allocation3], %s1685_s9 }
  0x43   : > { %s2083_s17 = scalar_select %p1748_p11, 1, 0 }
  0x46   : > { %s1756_s15 = scalar_lea.hbm %s2084_s0, %s1691_s11  ;;  %s1361_s23 = scalar_lea.hbm %s2084_s0, 1024 }
  0x47   : > { %s1356_s20 = scalar_lea.hbm %s1756_s15, 512  ;;  %p1362_p6 = scmp.lt.u32.totalorder %s1756_s15, %s2084_s0 }
  0x48   : > { %p1357_p12 = scmp.ne.s32.totalorder %s1756_s15, %s1356_s20  ;;  %p1363_p13 = scmp.lt.u32.totalorder %s1361_s23, %s1356_s20 }
  0x49   : > { %p1365_p5 = scmp.lt.u32.totalorder %s1356_s20, %s1756_s15 }
  0x4a   : > { %p1359_p1 = pnand %p1357_p12, %p1717_p4  ;;  %p1364_p3 = por %p1363_p13, %p1362_p6 }
  0x4c   : > { %p1360_p2 = pneg %p1359_p1  ;;  %p1366_p7 = por %p1365_p5, %p1364_p3 }
  0x4e   : > { %p1367_p10 = pnand %p1366_p7, %p1360_p2 }
  0x50   : > { %1370 = shalt.err (!%p1367_p10)
}
  0x51   : > { %s1371_s11 = scalar_lea.vmem %s1759_s1, 512  ;;  %s1573_s26 = smov [#allocation2]  }
  0x52   : > { %p1372_p8 = scmp.ne.s32.totalorder %s1759_s1, %s1371_s11  ;;  %s1376_s16 = sshll.u32 %s1573_s26, 4  ;;  %s1377_s16 = int_to_ptr.vmem [resolvable:$false] %s1376_s16 }
  0x53   : > { %s1378_s18 = scalar_lea.vmem %s1377_s16, 1024  ;;  %p1379_p1 = scmp.lt.s32.totalorder %s1759_s1, %s1377_s16 }
  0x54   : > { %p1374_p9 = pnand %p1372_p8, %p1717_p4  ;;  %p1380_p11 = scmp.lt.s32.totalorder %s1378_s18, %s1371_s11 }
  0x56   : > { %p1375_p12 = pneg %p1374_p9  ;;  %p1381_p6 = por %p1380_p11, %p1379_p1 }
  0x58   : > { %p1382_p13 = pnand %p1381_p6, %p1375_p12 }
  0x5a   : > { %1385 = shalt.err (!%p1382_p13)
}
  0x5b   : > { %s2085_s20 = smov 8   ;;  %s2086_s23 = smov 128  }
  0x5c   : > { %1233 = dma.hbm_to_vmem [thread:$0]  (!%p1695_p0), %s1756_s15, 512, %s1759_s1, %s226_s28, %s2086_s23, %s2086_s23, %s2085_s20  }
  0x5d   : > { %s272_s8 = scalar_lea.vmem [#allocation7], %s1688_s10  ;;  %s1113_s13 = sshll.u32 %s1685_s9, 4 }
  0x5e   : > { %s279_s25 = sshll.u32 %s272_s8, 4  ;;  %s1386_s14 = scalar_lea.hbm %s1765_s7, 512  ;;  %s1795_s25 = int_to_ptr.vmem [resolvable:$true] %s279_s25 }
  0x5f   : > { %p1387_p11 = scmp.ne.s32.totalorder %s1765_s7, %s1386_s14  ;;  %s1391_s16 = scalar_lea.hbm %s2050_s2, 1024 }
  0x60   : > { %p1392_p5 = scmp.lt.u32.totalorder %s1765_s7, %s2050_s2  ;;  %p1393_p7 = scmp.lt.u32.totalorder %s1391_s16, %s1386_s14 }
  0x61   : > { %p1389_p2 = pnand %p1387_p11, %p1717_p4  ;;  %p1395_p8 = scmp.lt.u32.totalorder %s1386_s14, %s1765_s7 }
  0x62   : > { %p1394_p10 = por %p1393_p7, %p1392_p5 }
  0x63   : > { %p1390_p3 = pneg %p1389_p2 }
  0x64   : > { %p1396_p9 = por %p1395_p8, %p1394_p10 }
  0x66   : > { %p1397_p12 = pnand %p1396_p9, %p1390_p3 }
  0x68   : > { %1400 = shalt.err (!%p1397_p12)
}
  0x69   : > { %s1401_s1 = scalar_lea.vmem %s1795_s25, 512  ;;  %s1574_s10 = smov [#allocation7]  }
  0x6a   : > { %p1402_p1 = scmp.ne.s32.totalorder %s1795_s25, %s1401_s1  ;;  %s1406_s28 = sshll.u32 %s1574_s10, 4  ;;  %s1407_s28 = int_to_ptr.vmem [resolvable:$false] %s1406_s28 }
  0x6b   : > { %s1408_s0 = scalar_lea.vmem %s1407_s28, 1024  ;;  %p1409_p11 = scmp.lt.s32.totalorder %s1795_s25, %s1407_s28 }
  0x6c   : > { %p1404_p6 = pnand %p1402_p1, %p1717_p4  ;;  %p1410_p2 = scmp.lt.s32.totalorder %s1408_s0, %s1401_s1 }
  0x6e   : > { %p1405_p13 = pneg %p1404_p6  ;;  %p1411_p5 = por %p1410_p2, %p1409_p11 }
  0x70   : > { %p1412_p7 = pnand %p1411_p5, %p1405_p13 }
  0x72   : > { %1415 = shalt.err (!%p1412_p7)
}
  0x73   : > { %1239 = dma.hbm_to_vmem [thread:$0]  (!%p1695_p0), %s1765_s7, 512, %s1795_s25, %s1711_s27, %s2086_s23, %s2086_s23, %s2085_s20  }
  0x74   : > { %s1142_s15 = sshll.u32 %s1564_s22, 8  ;;  %s293_s26 = scalar_lea.vmem [#allocation8], %s1113_s13 }
  0x75   : > { %s1827_s11 = scalar_lea.hbm %s2051_s3, %s1142_s15  ;;  %s301_s16 = sshll.u32 %s293_s26, 4  ;;  %s1831_s16 = int_to_ptr.vmem [resolvable:$true] %s301_s16 }
  0x76   : > { %s290_s18 = scalar_lea.sflag [#allocation9], %s1685_s9  ;;  %s1416_s1 = scalar_lea.hbm %s1827_s11, 256 }
  0x77   : > { %p1417_p3 = scmp.ne.s32.totalorder %s1827_s11, %s1416_s1  ;;  %s1421_s20 = scalar_lea.hbm %s2051_s3, 512 }
  0x78   : > { %p1422_p9 = scmp.lt.u32.totalorder %s1827_s11, %s2051_s3  ;;  %p1423_p12 = scmp.lt.u32.totalorder %s1421_s20, %s1416_s1 }
  0x79   : > { %p1419_p10 = pnand %p1417_p3, %p1717_p4  ;;  %p1425_p6 = scmp.lt.u32.totalorder %s1416_s1, %s1827_s11 }
  0x7a   : > { %p1424_p1 = por %p1423_p12, %p1422_p9 }
  0x7b   : > { %p1420_p8 = pneg %p1419_p10 }
  0x7c   : > { %p1426_p13 = por %p1425_p6, %p1424_p1 }
  0x7e   : > { %p1427_p11 = pnand %p1426_p13, %p1420_p8 }
  0x80   : > { %1430 = shalt.err (!%p1427_p11)
}
  0x81   : > { %s1431_s13 = scalar_lea.vmem %s1831_s16, 256  ;;  %s1575_s10 = smov [#allocation8]  }
  0x82   : > { %p1432_p2 = scmp.ne.s32.totalorder %s1831_s16, %s1431_s13  ;;  %s1436_s28 = sshll.u32 %s1575_s10, 4  ;;  %s1437_s28 = int_to_ptr.vmem [resolvable:$false] %s1436_s28 }
  0x83   : > { %s1438_s0 = scalar_lea.vmem %s1437_s28, 512  ;;  %p1439_p3 = scmp.lt.s32.totalorder %s1831_s16, %s1437_s28 }
  0x84   : > { %p1434_p5 = pnand %p1432_p2, %p1717_p4  ;;  %p1440_p10 = scmp.lt.s32.totalorder %s1438_s0, %s1431_s13 }
  0x86   : > { %p1435_p7 = pneg %p1434_p5  ;;  %p1441_p9 = por %p1440_p10, %p1439_p3 }
  0x88   : > { %p1442_p12 = pnand %p1441_p9, %p1435_p7 }
  0x8a   : > { %1445 = shalt.err (!%p1442_p12)
}
  0x8b   : > { %s1576_s15 = smov 64   ;;  %s1577_s8 = smov 4  }
  0x8c   : > { %1242 = dma.hbm_to_vmem [thread:$0]  (!%p1695_p0), %s1827_s11, 256, %s1831_s16, %s290_s18, %s1576_s15, %s1576_s15, %s1577_s8  }
  0x8d   : > { %p2087_p4 = scmp.ne.s32.totalorder %s2083_s17, 0 }
  0x8e   : > { %s1860_s29 = sand.u32 (!%p2087_p4), 1, %s1552_s19   ;;  %p2088_p8 = scmp.ne.s32.totalorder (!%p2087_p4), %s2073_s30, 0 }
  0x8f   : > { %313 = sbr.rel (%p2087_p4) target bundleno = 945 (0x3b1), region = 36  ;;  %s1863_s14 = sshll.u32 (!%p2087_p4), %s1860_s29, 5 }
  0x90   : > { %s316_s26 = scalar_lea.sflag (!%p2087_p4), [#allocation3], %s1860_s29  ;;  %s1867_s1 = scalar_lea.vmem (!%p2087_p4), [#allocation2], %s1863_s14 }
  0x96   : > { %1527 = dma.done.wait (%p2088_p8), %s316_s26, 512  }
  0x97   : > { %1529 = vsyncadd (%p2088_p8), %s316_s26, 4294966784  ;;  %s324_s9 = sand.u32 1, %s1647_s24   ;;  %s328_s17 = scalar_lea.vmem [#allocation5], %s1863_s14 }
  0x98   : > { %s325_s12 = scalar_lea.sflag [#allocation6], %s324_s9 }
  0x99   : > { %1531 = dma.done.wait (%p2088_p8), %s325_s12, 1024  }
  0x9a   : > { %1533 = vsyncadd (%p2088_p8), %s325_s12, 4294966272  ;;  %s1120_s11 = sshll.u32 %s1860_s29, 4  ;;  %s1881_s16 = scalar_lea.vmem [#allocation7], %s1863_s14 }
  0x9b   : > { %s343_s18 = scalar_lea.sflag [#allocation9], %s1860_s29  ;;  %s1886_s27 = scalar_lea.vmem [#allocation8], %s1120_s11 }
  0x9c   : > { %1535 = dma.done.wait (%p2088_p8), %s343_s18, 256  }
  0x9d   : > { %1537 = vsyncadd (%p2088_p8), %s343_s18, 4294967040  ;;  %v1578_v0 = vmov 0.0   ;;  %vm1579_vm0 = vmmov 0   ;;  %v408_v1 = vld [vmem:[%s328_s17] sm:$0xff]  ;;  %vm424_vm1 = vcmask 261120   ;;  %v409_v2 = vld [vmem:[%s328_s17 + $0x8] sm:$0xff] }
  0x9e   : > { %1170 = vmatprep.subr.bf16.mxu0 %v1578_v0  ;;  %1176 = vmatprep.subr.bf16.mxu1 %v1578_v0  ;;  %v412_v3 = vpack.c.bf16 %v408_v1, %v408_v1  ;;  %v413_v4 = vpack.c.bf16 %v409_v2, %v409_v2  ;;  %v410_v5 = vld [vmem:[%s328_s17 + $0x10] sm:$0xff]  ;;  %v411_v6 = vld [vmem:[%s328_s17 + $0x18] sm:$0xff]  ;;  %v400_v9 = vld [vmem:[%s1867_s1] sm:$0xff]  ;;  %vm613_vm2 = vcmask 64512   ;;  %vm690_vm3 = vcmask 1043456   ;;  %s392_s24 = scalar_lea.vmem [#allocation11], %s1120_s11 }
  0x9f   : > { %1172 = vmatprep.mubr.msk.bf16.mxu0 %vm1579_vm0, %v1578_v0  ;;  %1178 = vmatprep.mubr.msk.bf16.mxu1 %vm1579_vm0, %v1578_v0  ;;  %v401_v10 = vld [vmem:[%s1867_s1 + $0x8] sm:$0xff]  ;;  %v414_v11 = vpack.c.bf16 %v410_v5, %v410_v5  ;;  %v415_v12 = vpack.c.bf16 %v411_v6, %v411_v6  ;;  %v404_v13 = vpack.c.bf16 %v400_v9, %v400_v9  ;;  %v402_v17 = vld [vmem:[%s1867_s1 + $0x10] sm:$0xff]  ;;  %v403_v18 = vld [vmem:[%s1867_s1 + $0x18] sm:$0xff]  ;;  %vm674_vm4 = vcmask 60416   ;;  %s1144_s30 = sshll.u32 %s1560_s21, 8  ;;  %s913_s25 = sshll.u32 %s392_s24, 4  ;;  %s1962_s25 = int_to_ptr.vmem [resolvable:$true] %s913_s25 }
  0xa0   : > { %v429_v7 = vsel %vm424_vm1, %v412_v3, 0  ;;  %v475_v8 = vsel %vm424_vm1, %v413_v4, 0  ;;  %v405_v14 = vpack.c.bf16 %v401_v10, %v401_v10  ;;  %v406_v19 = vpack.c.bf16 %v402_v17, %v402_v17  ;;  %v1146_v21 = vld [vmem:[%s1886_s27] sm:$0xff]   ;;  %v1153_v32 = vld [vmem:[%s1886_s27 + $0x8] sm:$0xff]   ;;  %s1960_s23 = scalar_lea.hbm %s2053_s5, %s1144_s30  ;;  %s882_s13 = scalar_lea.sflag [#allocation12], %s1860_s29 }
  0xa1   : > { %1171 = vmatpush3.bf16.xpose.msra.mxu0 %v429_v7  ;;  %1177 = vmatpush3.bf16.xpose.msra.mxu1 %v475_v8  ;;  %v521_v15 = vsel %vm424_vm1, %v414_v11, 0  ;;  %v567_v16 = vsel %vm424_vm1, %v415_v12, 0  ;;  %v407_v20 = vpack.c.bf16 %v403_v18, %v403_v18  ;;  %v1147_v22 = vunpack.c.l.bf16 %v1146_v21  ;;  %s1446_s10 = scalar_lea.vmem %s1962_s25, 256  ;;  %p2089_p1 = scmp.ne.s32.totalorder %s2074_s6, 0 }
  0xa2   : > { %1182 = vmatprep.subr.bf16.mxu0 %v1578_v0  ;;  %1188 = vmatprep.subr.bf16.mxu1 %v1578_v0  ;;  %v1148_v23 = vunpack.c.h.bf16 %v1146_v21  ;;  %v1151_v38 = vunpack.c.l.bf16 %v1153_v32  ;;  %v1152_v39 = vunpack.c.h.bf16 %v1153_v32  ;;  %v682_v32 = vld [vmem:[%s1881_s16 + $0x18] sm:$0xff]  ;;  %p1447_p0 = scmp.ne.s32.totalorder %s1962_s25, %s1446_s10  ;;  %s1580_s28 = smov [#allocation11]  }
  0xa3   : > { %s1450_s0 = sshll.u32 %s1580_s28, 4  ;;  %s1451_s0 = int_to_ptr.vmem [resolvable:$false] %s1450_s0 }
  0xa4   : > { %p1448_p6 = pnand %p1447_p0, %p2089_p1  ;;  %s1452_s15 = scalar_lea.vmem %s1451_s0, 512 }
  0xa5   : > { %p1453_p11 = scmp.lt.s32.totalorder %s1962_s25, %s1451_s0  ;;  %p1454_p2 = scmp.lt.s32.totalorder %s1452_s15, %s1446_s10 }
  0xa6   : > { %p1449_p13 = pneg %p1448_p6 }
  0xa7   : > { %p1455_p5 = por %p1454_p2, %p1453_p11 }
  0xa8   : > { %1173 = vmatmul.mubr.msk.bf16.vlgmr.msra.gmra.mrb[0].mxu0 %vm424_vm1, %v404_v13  ;;  %1179 = vmatmul.mubr.msk.bf16.vlgmr.msra.gmra.mrb[0].mxu1 %vm424_vm1, %v405_v14 }
  0xa9   : > { %1183 = vmatpush3.bf16.xpose.msra.mxu0 %v521_v15  ;;  %1189 = vmatpush3.bf16.xpose.msra.mxu1 %v567_v16  ;;  %p1456_p7 = pnand %p1455_p5, %p1449_p13 }
  0xaa   : > { %1184 = vmatprep.mubr.msk.bf16.mxu0 %vm1579_vm0, %v1578_v0  ;;  %1190 = vmatprep.mubr.msk.bf16.mxu1 %vm1579_vm0, %v1578_v0 }
  0xab   : > { %1194 = vmatprep.subr.bf16.mxu0 %v1578_v0  ;;  %1200 = vmatprep.subr.bf16.mxu1 %v1578_v0 }
  0xb0   : > { %1185 = vmatmul.mubr.msk.bf16.vlgmr.msra.gmra.mrb[4].mxu0 %vm424_vm1, %v406_v19  ;;  %1191 = vmatmul.mubr.msk.bf16.vlgmr.msra.gmra.mrb[4].mxu1 %vm424_vm1, %v407_v20  ;;  %v679_v20 = vld [vmem:[%s1881_s16] sm:$0xff] }
  0xb1   : > { %1196 = vmatprep.mubr.msk.bf16.mxu0 %vm1579_vm0, %v1578_v0  ;;  %1202 = vmatprep.mubr.msk.bf16.mxu1 %vm1579_vm0, %v1578_v0  ;;  %v683_v21 = vpack.c.bf16 %v679_v20, %v679_v20 }
 0x17b   : > { %v465_v24 = vpop.f32.mrb[0].mxu0  ;;  %v511_v25 = vpop.f32.mrb[0].mxu1 }
 0x17c   : > { %v466_v26 = vadd.f32 %v1147_v22, %v465_v24  ;;  %v1174_v27 = vpop.f32.mrb[1].mxu0  ;;  %v512_v28 = vadd.f32 %v1148_v23, %v511_v25  ;;  %v1180_v29 = vpop.f32.mrb[1].mxu1  ;;  %v692_v22 = vsel %vm690_vm3, %v683_v21, 0  ;;  %v680_v23 = vld [vmem:[%s1881_s16 + $0x8] sm:$0xff] }
 0x17d   : > { %v468_v30 = vpop.f32.mrb[2].mxu0  ;;  %v514_v31 = vpop.f32.mrb[2].mxu1  ;;  %1195 = vmatpush3.bf16.msra.mxu0 %v692_v22  ;;  %v684_v24 = vpack.c.bf16 %v680_v23, %v680_v23 }
 0x17e   : > { %v609_v33 = vmul.f32 0.17677669, %v466_v26  ;;  %v610_v34 = vmul.f32 0.17677669, %v512_v28  ;;  %v1175_v35 = vpop.f32.mrb[3].mxu0  ;;  %v1181_v36 = vpop.f32.mrb[3].mxu1  ;;  %1206 = vmatprep.subr.bf16.mxu0 %v1578_v0 }
 0x17f   : > { %v738_v25 = vsel %vm690_vm3, %v684_v24, 0  ;;  %v681_v28 = vld [vmem:[%s1881_s16 + $0x10] sm:$0xff] }
 0x180   : > { %v614_v37 = vsel %vm613_vm2, %v609_v33, -inf  ;;  %v617_v40 = vsel %vm613_vm2, %v610_v34, -inf  ;;  %1201 = vmatpush3.bf16.msra.mxu1 %v738_v25  ;;  %v685_v30 = vpack.c.bf16 %v681_v28, %v681_v28 }
 0x181   : > { %615 = vmax.xlane.f32.xlu0 %v614_v37  ;;  %1212 = vmatprep.subr.bf16.mxu1 %v1578_v0  ;;  %v686_v37 = vpack.c.bf16 %v682_v32, %v682_v32 }
 0x182   : > { %v784_v36 = vsel %vm690_vm3, %v685_v30, 0 }
 0x183   : > { %v557_v41 = vpop.f32.mrb[4].mxu0  ;;  %v603_v42 = vpop.f32.mrb[4].mxu1 }
 0x184   : > { %v558_v43 = vadd.f32 %v1151_v38, %v557_v41  ;;  %v1186_v44 = vpop.f32.mrb[5].mxu0  ;;  %v604_v45 = vadd.f32 %v1152_v39, %v603_v42  ;;  %v1192_v46 = vpop.f32.mrb[5].mxu1  ;;  %v830_v41 = vsel %vm690_vm3, %v686_v37, 0 }
 0x185   : > { %618 = vmax.xlane.f32.xlu0 %v617_v40  ;;  %v560_v47 = vpop.f32.mrb[6].mxu0  ;;  %v606_v48 = vpop.f32.mrb[6].mxu1 }
 0x186   : > { %v611_v49 = vmul.f32 0.17677669, %v558_v43  ;;  %v612_v50 = vmul.f32 0.17677669, %v604_v45  ;;  %v1187_v51 = vpop.f32.mrb[7].mxu0  ;;  %v1193_v52 = vpop.f32.mrb[7].mxu1 }
 0x188   : > { %v620_v53 = vsel %vm613_vm2, %v611_v49, -inf  ;;  %v623_v54 = vsel %vm613_vm2, %v612_v50, -inf }
 0x189   : > { %621 = vmax.xlane.f32.xlu1 %v620_v53 }
 0x18d   : > { %624 = vmax.xlane.f32.xlu1 %v623_v54 }
 0x20e   : > { %v616_v55 = vpop.xlane.xlu0 %615 }
 0x20f   : > { %v626_v56 = vsub.f32 %v609_v33, %v616_v55 }
 0x211   : > { %v630_v57 = vpack.c.bf16 %v626_v56, %v626_v56 }
 0x212   : > { %v619_v58 = vpop.xlane.xlu0 %618 }
 0x213   : > { %v635_v59 = vmul.bf16 1069105081, %v630_v57  ;;  %v627_v60 = vsub.f32 %v610_v34, %v619_v58 }
 0x215   : > { %1310 = vpow.bf16 %v635_v59  ;;  %v631_v61 = vpack.c.bf16 %v627_v60, %v627_v60 }
 0x216   : > { %v622_v62 = vpop.xlane.xlu1 %621 }
 0x217   : > { %v638_v63 = vmul.bf16 1069105081, %v631_v61  ;;  %v628_v1 = vsub.f32 %v611_v49, %v622_v62 }
 0x219   : > { %1312 = vpow.bf16 %v638_v63  ;;  %v632_v2 = vpack.c.bf16 %v628_v1, %v628_v1 }
 0x21a   : > { %v625_v3 = vpop.xlane.xlu1 %624 }
 0x21b   : > { %v641_v4 = vmul.bf16 1069105081, %v632_v2  ;;  %v629_v5 = vsub.f32 %v612_v50, %v625_v3 }
 0x21d   : > { %1314 = vpow.bf16 %v641_v4  ;;  %v633_v6 = vpack.c.bf16 %v629_v5, %v629_v5 }
 0x21f   : > { %v644_v7 = vmul.bf16 1069105081, %v633_v6 }
 0x220   : > { %v1311_v8 = vpop.eup %1310 }
 0x221   : > { %1316 = vpow.bf16 %v644_v7  ;;  %v646_v9 = vunpack.c.l.bf16 %v1311_v8 }
 0x223   : > { %v650_v10 = vsel %vm613_vm2, %v646_v9, 0.0 }
 0x224   : > { %v1313_v11 = vpop.eup %1312  ;;  %651 = vadd.xlane.f32.xlu0 %v650_v10 }
 0x225   : > { %v647_v12 = vunpack.c.l.bf16 %v1313_v11 }
 0x227   : > { %v653_v13 = vsel %vm613_vm2, %v647_v12, 0.0 }
 0x228   : > { %v1315_v14 = vpop.eup %1314  ;;  %654 = vadd.xlane.f32.xlu1 %v653_v13 }
 0x229   : > { %v648_v15 = vunpack.c.l.bf16 %v1315_v14 }
 0x22b   : > { %v656_v16 = vsel %vm613_vm2, %v648_v15, 0.0 }
 0x22c   : > { %v1317_v17 = vpop.eup %1316  ;;  %657 = vadd.xlane.f32.xlu0 %v656_v16 }
 0x22d   : > { %v649_v18 = vunpack.c.l.bf16 %v1317_v17 }
 0x22f   : > { %v659_v19 = vsel %vm613_vm2, %v649_v18, 0.0 }
 0x230   : > { %660 = vadd.xlane.f32.xlu1 %v659_v19 }
 0x2b1   : > { %v652_v26 = vpop.xlane.xlu0 %651 }
 0x2b2   : > { %1318 = vrcp.f32 %v652_v26 }
 0x2b5   : > { %v655_v27 = vpop.xlane.xlu1 %654 }
 0x2b6   : > { %1320 = vrcp.f32 %v655_v27 }
 0x2b9   : > { %v658_v29 = vpop.xlane.xlu0 %657 }
 0x2ba   : > { %1322 = vrcp.f32 %v658_v29 }
 0x2bc   : > { %v1319_v31 = vpop.eup %1318 }
 0x2bd   : > { %v666_v33 = vmul.f32 %v1319_v31, %v646_v9  ;;  %v661_v34 = vpop.xlane.xlu1 %660 }
 0x2be   : > { %1324 = vrcp.f32 %v661_v34 }
 0x2bf   : > { %v670_v35 = vpack.c.bf16 %v666_v33, %v666_v33 }
 0x2c0   : > { %v1321_v38 = vpop.eup %1320 }
 0x2c1   : > { %v667_v39 = vmul.f32 %v1321_v38, %v647_v12  ;;  %675 = vst.msk [vmem:[%s392_s24] sm:$0xf] %vm674_vm4, %v670_v35  ;;  %1197 = vmatmul.mubr.msk.bf16.vlgmr.msra.gmra.mrb[8].mxu0 %vm613_vm2, %v670_v35 }
 0x2c2   : > { %1207 = vmatpush3.bf16.msra.mxu0 %v784_v36  ;;  %1208 = vmatprep.mubr.msk.bf16.mxu0 %vm1579_vm0, %v1578_v0 }
 0x2c3   : > { %v671_v40 = vpack.c.bf16 %v667_v39, %v667_v39 }
 0x2c4   : > { %v1323_v42 = vpop.eup %1322 }
 0x2c5   : > { %v668_v43 = vmul.f32 %v1323_v42, %v648_v15  ;;  %676 = vst.msk [vmem:[%s392_s24 + $0x4] sm:$0xf] %vm674_vm4, %v671_v40  ;;  %1203 = vmatmul.mubr.msk.bf16.vlgmr.msra.gmra.mrb[8].mxu1 %vm613_vm2, %v671_v40 }
 0x2c6   : > { %1213 = vmatpush3.bf16.msra.mxu1 %v830_v41  ;;  %1214 = vmatprep.mubr.msk.bf16.mxu1 %vm1579_vm0, %v1578_v0 }
 0x2c7   : > { %v672_v44 = vpack.c.bf16 %v668_v43, %v668_v43 }
 0x2c8   : > { %v1325_v45 = vpop.eup %1324 }
 0x2c9   : > { %677 = vst.msk [vmem:[%s392_s24 + $0x8] sm:$0xf] %vm674_vm4, %v672_v44  ;;  %v669_v46 = vmul.f32 %v1325_v45, %v649_v18  ;;  %1209 = vmatmul.mubr.msk.bf16.vlgmr.msra.gmra.mrb[12].mxu0 %vm613_vm2, %v672_v44 }
 0x2cb   : > { %v673_v47 = vpack.c.bf16 %v669_v46, %v669_v46 }
 0x2cd   : > { %678 = vst.msk [vmem:[%s392_s24 + $0xc] sm:$0xf] %vm674_vm4, %v673_v47  ;;  %1215 = vmatmul.mubr.msk.bf16.vlgmr.msra.gmra.mrb[12].mxu1 %vm613_vm2, %v673_v47 }
 0x2ce   : > { %1459 = shalt.err (!%p1456_p7)
}
 0x2cf   : > { %s1460_s8 = scalar_lea.hbm %s1960_s23, 256  ;;  %s1464_s9 = scalar_lea.hbm %s2053_s5, 512 }
 0x2d0   : > { %p1461_p3 = scmp.ne.s32.totalorder %s1960_s23, %s1460_s8  ;;  %p1465_p12 = scmp.lt.u32.totalorder %s1960_s23, %s2053_s5 }
 0x2d1   : > { %p1466_p4 = scmp.lt.u32.totalorder %s1464_s9, %s1460_s8  ;;  %p1468_p0 = scmp.lt.u32.totalorder %s1460_s8, %s1960_s23 }
 0x2d2   : > { %p1462_p10 = pnand %p1461_p3, %p2089_p1 }
 0x2d3   : > { %p1467_p8 = por %p1466_p4, %p1465_p12 }
 0x2d4   : > { %p1463_p9 = pneg %p1462_p10 }
 0x2d5   : > { %p1469_p6 = por %p1468_p0, %p1467_p8 }
 0x2d7   : > { %p1470_p13 = pnand %p1469_p6, %p1463_p9 }
 0x2d9   : > { %1473 = shalt.err (!%p1470_p13)
}
 0x2da   : > { %s1581_s11 = smov 64   ;;  %s1582_s16 = smov 4  }
 0x2db   : > { %1227 = dma.vmem_to_hbm [thread:$0]  (%p2089_p1), %s1962_s25, 256, %s1960_s23, %s882_s13, %s1581_s11, %s1581_s11, %s1582_s16  }
 0x2dc   : > { %s385_s18 = scalar_lea.vmem [#allocation10], %s1863_s14  ;;  %s1143_s24 = sshll.u32 %s1560_s21, 9 }
 0x2dd   : > { %s896_s27 = sshll.u32 %s385_s18, 4  ;;  %s1998_s7 = scalar_lea.hbm %s2052_s4, %s1143_s24  ;;  %s1992_s27 = int_to_ptr.vmem [resolvable:$true] %s896_s27 }
 0x2de   : > { %s877_s21 = scalar_lea.sflag [#allocation4], %s1860_s29  ;;  %s1474_s20 = scalar_lea.vmem %s1992_s27, 512 }
 0x2df   : > { %p1475_p11 = scmp.ne.s32.totalorder %s1992_s27, %s1474_s20  ;;  %s1583_s23 = smov [#allocation10]  }
 0x2e0   : > { %s1478_s25 = sshll.u32 %s1583_s23, 4  ;;  %s1479_s25 = int_to_ptr.vmem [resolvable:$false] %s1478_s25 }
 0x2e1   : > { %p1476_p2 = pnand %p1475_p11, %p2089_p1  ;;  %s1480_s13 = scalar_lea.vmem %s1479_s25, 1024 }
 0x2e2   : > { %p1481_p7 = scmp.lt.s32.totalorder %s1992_s27, %s1479_s25  ;;  %p1482_p3 = scmp.lt.s32.totalorder %s1480_s13, %s1474_s20 }
 0x2e3   : > { %p1477_p5 = pneg %p1476_p2 }
 0x2e4   : > { %p1483_p10 = por %p1482_p3, %p1481_p7 }
 0x2e6   : > { %p1484_p9 = pnand %p1483_p10, %p1477_p5 }
 0x394   : > { %v728_v0 = vpop.f32.mrb[8].mxu0 }
 0x395   : > { %872 = vst.msk [vmem:[%s385_s18] sm:$0xff] %vm424_vm1, %v728_v0  ;;  %v1198_v48 = vpop.f32.mrb[9].mxu0 }
 0x396   : > { %v731_v49 = vpop.f32.mrb[10].mxu0 }
 0x397   : > { %v1199_v50 = vpop.f32.mrb[11].mxu0 }
 0x398   : > { %v774_v51 = vpop.f32.mrb[8].mxu1 }
 0x399   : > { %873 = vst.msk [vmem:[%s385_s18 + $0x8] sm:$0xff] %vm424_vm1, %v774_v51  ;;  %v1204_v52 = vpop.f32.mrb[9].mxu1 }
 0x39a   : > { %v777_v53 = vpop.f32.mrb[10].mxu1 }
 0x39b   : > { %v1205_v54 = vpop.f32.mrb[11].mxu1 }
 0x39c   : > { %v820_v55 = vpop.f32.mrb[12].mxu0 }
 0x39d   : > { %874 = vst.msk [vmem:[%s385_s18 + $0x10] sm:$0xff] %vm424_vm1, %v820_v55  ;;  %v1210_v56 = vpop.f32.mrb[13].mxu0 }
 0x39e   : > { %v823_v57 = vpop.f32.mrb[14].mxu0 }
 0x39f   : > { %v1211_v58 = vpop.f32.mrb[15].mxu0 }
 0x3a0   : > { %v866_v59 = vpop.f32.mrb[12].mxu1 }
 0x3a1   : > { %875 = vst.msk [vmem:[%s385_s18 + $0x18] sm:$0xff] %vm424_vm1, %v866_v59  ;;  %v1216_v60 = vpop.f32.mrb[13].mxu1 }
 0x3a2   : > { %v869_v61 = vpop.f32.mrb[14].mxu1 }
 0x3a3   : > { %1487 = shalt.err (!%p1484_p9)
}
 0x3a4   : > { %s1488_s10 = scalar_lea.hbm %s1998_s7, 512  ;;  %s1492_s15 = scalar_lea.hbm %s2052_s4, 1024 }
 0x3a5   : > { %p1489_p12 = scmp.ne.s32.totalorder %s1998_s7, %s1488_s10  ;;  %p1493_p0 = scmp.lt.u32.totalorder %s1998_s7, %s2052_s4 }
 0x3a6   : > { %p1494_p6 = scmp.lt.u32.totalorder %s1492_s15, %s1488_s10  ;;  %p1496_p11 = scmp.lt.u32.totalorder %s1488_s10, %s1998_s7 }
 0x3a7   : > { %p1490_p4 = pnand %p1489_p12, %p2089_p1 }
 0x3a8   : > { %p1495_p13 = por %p1494_p6, %p1493_p0 }
 0x3a9   : > { %p1491_p8 = pneg %p1490_p4 }
 0x3aa   : > { %p1497_p2 = por %p1496_p11, %p1495_p13 }
 0x3ac   : > { %p1498_p5 = pnand %p1497_p2, %p1491_p8 }
 0x3ae   : > { %1501 = shalt.err (!%p1498_p5)
}
 0x3af   : > { %s1584_s1 = smov 128   ;;  %s1585_s9 = smov 8   ;;  %v1217_v62 = vpop.f32.mrb[15].mxu1 }
 0x3b0   : > { %1226 = dma.vmem_to_hbm [thread:$0]  (%p2089_p1), %s1992_s27, 512, %s1998_s7, %s877_s21, %s1584_s1, %s1584_s1, %s1585_s9  }
 0x3b1 PF: > { %s2090_s12 = sld [smem:[#allocation18_spill]]  ;;  %s2091_s17 = sld [smem:[#allocation23_spill]] }
 0x3b2   : > { %s2092_s11 = sld [smem:[#allocation20_spill]] }
 0x3b7   : > { %s928_s16 = sand.u32 1, %s2090_s12   ;;  %p2093_p7 = scmp.ne.s32.totalorder %s2091_s17, 0 }
 0x3b8   : > { %p2094_p3 = scmp.ge.s32.totalorder %s2092_s11, 2  ;;  %s929_s18 = scalar_lea.sflag [#allocation4], %s928_s16 }
 0x3ba   : > { %p1244_p10 = pnand %p2094_p3, %p2093_p7 }
 0x3bc   : > { %1539 = dma.done.wait (!%p1244_p10), %s929_s18, 512  }
 0x3bd   : > { %1541 = vsyncadd (!%p1244_p10), %s929_s18, 4294966784  ;;  %s938_s24 = scalar_lea.sflag [#allocation12], %s928_s16 }
 0x3be   : > { %1543 = dma.done.wait (!%p1244_p10), %s938_s24, 256  }
 0x3bf   : > { %1545 = vsyncadd (!%p1244_p10), %s938_s24, 4294967040  ;;  %s31_s23 = sadd.s32 1, %s2092_s11   ;;  %s2095_s6 = sld [smem:[#allocation19_spill]] }
 0x3c0   : > { %p28_p9 = scmp.ge.s32.totalorder %s31_s23, 4   ;;  %s2096_s20 = sld [smem:[#allocation22_spill]] }
 0x3c1   : > { %s2097_s29 = sld [smem:[#allocation21_spill]]  ;;  %s2098_s18 = smov %s1552_s19 }
 0x3c2   : > { %s2100_s21 = smov %s1564_s22  ;;  %30 = sbr.rel (!%p28_p9) target bundleno = 15 (0xf), region = 135 }
 0x3c5   : > { %s2099_s19 = smov %s2095_s6 }
 0x3c7   : > { %s2101_s22 = smov %s2097_s29 }
 0x3c9   :  { %943 = vsyncpa [#allocation3], 1 }
 0x3ca   :  { %945 = vsyncpa [#allocation3 + $0x1], 1 }
 0x3cb   :  { %946 = vsyncpa [#allocation6], 1 }
 0x3cc   :  { %948 = vsyncpa [#allocation6 + $0x1], 1 }
 0x3cd   :  { %949 = vsyncpa [#allocation9], 1 }
 0x3ce   :  { %951 = vsyncpa [#allocation9 + $0x1], 1 }
 0x3cf   :  { %952 = vsyncpa [#allocation4], 1 }
 0x3d0   :  { %954 = vsyncpa [#allocation4 + $0x1], 1 }
 0x3d1   :  { %955 = vsyncpa [#allocation12], 1 }
 0x3d2   :  { %957 = vsyncpa [#allocation12 + $0x1], 1 }

</bundles_post_ra>
